<compile_context>
chip_gen: v6e
topology: v6e:2x2x1
jax: 0.10.0
libtpu: 0.0.40
codegen_flags: <defaults>
</compile_context>

<pallas_src>
import functools

import numpy as np
import jax
import jax.numpy as jnp
from jax import lax
from jax.experimental import pallas as pl
from jax.experimental.pallas import tpu as pltpu


def _fused_embed_kernel(idx_ref, table_ref, out_ref, *, V, Fv):
    """Fused triple-lookup + concat as ONE MXU matmul.

    idx_ref   : (TM, 3) int32 -- raw indices (x, ldist, rdist); offsets applied here
    table_ref : (K, Dp) f32   -- block-diagonal combined table [Wv | pf1 | pf2]
    out_ref   : (TM, Dp) f32  -- already-concatenated embeddings
    """
    TM = idx_ref.shape[0]
    K = table_ref.shape[0]

    idx = idx_ref[...]                                     # (TM, 3)
    iota = lax.broadcasted_iota(jnp.int32, (TM, K), 1)     # (TM, K)

    # Combined one-hot over the concatenated vocabulary; the three index ranges are
    # disjoint after the compile-time-constant offsets (applied in-kernel, not in the
    # wrapper).  Out-of-range / negative indices match nothing -> zero rows.
    onehot = ((idx[:, 0:1] == iota)
              | ((idx[:, 1:2] + V) == iota)
              | ((idx[:, 2:3] + (V + Fv)) == iota)).astype(table_ref.dtype)

    # Exact row selection: with HIGHEST precision the f32 table rows are reconstructed
    # exactly through the MXU bf16 passes (one-hot operand is exactly 0/1).
    out_ref[...] = jnp.dot(
        onehot, table_ref[...],
        preferred_element_type=jnp.float32,
        precision=lax.Precision.HIGHEST,
    ).astype(out_ref.dtype)


def _pick_tile_m(M: int) -> int:
    """Row-tile size over flattened (B*S).

    Small M -> one unpadded grid step.  Large M -> the largest of {2048,1024,512}
    that divides M (no padded rows, no output slice).  On v7x (2 TensorCores) the
    large-M case naturally yields >= 2 parallel grid steps for megacore sharding.
    """
    if M <= 2048:
        return ((M + 7) // 8) * 8          # single step; pads only if M % 8 != 0
    for tm in (2048, 1024, 512):
        if M % tm == 0:
            return tm
    return 1024                            # padded fallback


class GetEmbeddingsPallas:
    """Pallas equivalent of the PyTorch getEmbeddings module.

    The combined embedding table is built once here (module init), matching the
    PyTorch module copying Wv/pf1/pf2 into its Embedding weights at init.
    """

    def __init__(self, Wv, pf1, pf2):
        Wv = np.asarray(Wv, np.float32)
        pf1 = np.asarray(pf1, np.float32)
        pf2 = np.asarray(pf2, np.float32)
        assert pf1.shape == pf2.shape
        self.V, self.word_size = Wv.shape
        self.Fv, self.feat_size = pf1.shape
        self.K = self.V + 2 * self.Fv
        self.D = self.word_size + 2 * self.feat_size
        # Keep the output lane dim a multiple of 128 (lane-dense unmasked vst).
        # D == 128 for the reference config, so no column padding happens.
        self.Dp = ((self.D + 127) // 128) * 128

        table = np.zeros((self.K, self.Dp), np.float32)
        table[:self.V, :self.word_size] = Wv
        table[self.V:self.V + self.Fv,
              self.word_size:self.word_size + self.feat_size] = pf1
        table[self.V + self.Fv:,
              self.word_size + self.feat_size:self.D] = pf2
        self.table = jnp.asarray(table)            # one-time device upload

        self._forward = jax.jit(self._forward_impl)

    def __call__(self, x, ldist, rdist):
        return self._forward(self.table, x, ldist, rdist)

    def _forward_impl(self, table, x, ldist, rdist):
        B, S = x.shape
        V, Fv, K, D, Dp = self.V, self.Fv, self.K, self.D, self.Dp
        M = B * S

        TM = _pick_tile_m(M)
        grid_m = pl.cdiv(M, TM)
        M_pad = grid_m * TM

        # One stacked (M, 3) int32 index array -> a single small DMA per tile.
        idx = jnp.stack(
            [x.reshape(M).astype(jnp.int32),
             ldist.reshape(M).astype(jnp.int32),
             rdist.reshape(M).astype(jnp.int32)], axis=-1)
        if M_pad != M:
            # -K matches no table row even after the in-kernel offsets; padded rows
            # are sliced off below anyway.
            idx = jnp.pad(idx, ((0, M_pad - M), (0, 0)), constant_values=-K)

        kernel = functools.partial(_fused_embed_kernel, V=V, Fv=Fv)

        cost = pl.CostEstimate(
            flops=2 * M_pad * K * Dp,
            transcendentals=0,
            bytes_accessed=M_pad * 3 * 4 + K * Dp * 4 + M_pad * Dp * 4,
        )

        # 2x idx + 2x table + 2x out buffers + (TM, K) one-hot live values.
        vmem_needed = (2 * TM * 3 * 4 + 2 * K * Dp * 4
                       + 2 * TM * Dp * 4 + TM * K * 4)
        cp_kwargs = dict(dimension_semantics=("parallel",))
        if vmem_needed > (16 << 20):       # only override the default scoped limit
            cp_kwargs["vmem_limit_bytes"] = min(int(vmem_needed * 3 // 2), 100 << 20)

        out = pl.pallas_call(
            kernel,
            out_shape=jax.ShapeDtypeStruct((M_pad, Dp), jnp.float32),
            grid=(grid_m,),
            in_specs=[
                pl.BlockSpec((TM, 3), lambda i: (i, 0)),   # stacked raw indices
                pl.BlockSpec((K, Dp), lambda i: (0, 0)),   # combined table (grid-invariant)
            ],
            out_specs=pl.BlockSpec((TM, Dp), lambda i: (i, 0)),
            compiler_params=pltpu.CompilerParams(**cp_kwargs),
            cost_estimate=cost,
        )(idx, table)

        # TODO(synk): for real word-embedding vocabularies (K >~ a few thousand) the
        # one-hot MXU path must be replaced by a scalar-prefetch row gather
        # (PrefetchScalarGridSpec + pl.Element(1) index maps, table kept in HBM /
        # single-buffered) -- the (TM, K) one-hot and a resident K x Dp table do not
        # fit VMEM at that scale (esp. v7x, 64 MiB).

        if M_pad != M or Dp != D:
            out = out[:M, :D]
        return out.reshape(B, S, D)[:, None, :, :]   # PyTorch: concat.unsqueeze(1)


if __name__ == "__main__":
    # Small shapes consistent with the module's forward.
    B, S = 2, 8                             # batch, sequence length
    word_length, word_size = 16, 96
    feature_length, feature_size = 12, 16

    key = jax.random.PRNGKey(0)
    k_wv, k_p1, k_p2, k_x, k_l, k_r = jax.random.split(key, 6)

    # Deterministic "pretrained" embedding tables (the module copies these in).
    Wv = jax.random.normal(k_wv, (word_length, word_size), dtype=jnp.float32)
    pf1 = jax.random.normal(k_p1, (feature_length, feature_size), dtype=jnp.float32)
    pf2 = jax.random.normal(k_p2, (feature_length, feature_size), dtype=jnp.float32)

    x = jax.random.randint(k_x, (B, S), 0, word_length, dtype=jnp.int32)
    ldist = jax.random.randint(k_l, (B, S), 0, feature_length, dtype=jnp.int32)
    rdist = jax.random.randint(k_r, (B, S), 0, feature_length, dtype=jnp.int32)

    module = GetEmbeddingsPallas(Wv, pf1, pf2)       # combined table built once here
    out = jax.block_until_ready(module(x, ldist, rdist))

    # Pure-JAX reference for the forward semantics.
    ref = jnp.concatenate([Wv[x], pf1[ldist], pf2[rdist]], axis=-1)[:, None, :, :]
    assert out.shape == (B, 1, S, word_size + 2 * feature_size), out.shape
    np.testing.assert_allclose(np.asarray(out), np.asarray(ref), rtol=0, atol=1e-6)

    print("KERNEL_OK")
</pallas_src>

<mosaic_0001>
module attributes {stable_mosaic.version = 11 : i64} {
  func.func @_fused_embed_kernel(%arg0: i32, %arg1: memref<16x3xi32, #tpu.memory_space<vmem>>, %arg2: memref<40x128xf32, #tpu.memory_space<vmem>>, %arg3: memref<16x128xf32, #tpu.memory_space<vmem>>) attributes {dimension_semantics = [#tpu.dimension_semantics<parallel>], iteration_bounds = array<i64: 1>, scalar_prefetch = 0 : i64, scratch_operands = 0 : i64, tpu.core_type = #tpu.core_type<tc>, window_params = [{transform_indices = @transform_0, window_bounds = array<i64: 16, 3>}, {pipeline_mode = #tpu.pipeline_mode<synchronous>, transform_indices = @transform_1, window_bounds = array<i64: 40, 128>}, {transform_indices = @transform_2, window_bounds = array<i64: 16, 128>}]} {
    %c0 = arith.constant 0 : index
    %c0_0 = arith.constant 0 : index
    %0 = vector.load %arg1[%c0, %c0_0] : memref<16x3xi32, #tpu.memory_space<vmem>>, vector<16x3xi32>
    %1 = tpu.iota {dimensions = array<i32: 1>} : vector<16x40xi32>
    %2 = vector.extract_strided_slice %0 {offsets = [0, 0], sizes = [16, 1], strides = [1, 1]} : vector<16x3xi32> to vector<16x1xi32>
    %3 = vector.broadcast %2 : vector<16x1xi32> to vector<16x40xi32>
    %4 = arith.cmpi eq, %3, %1 : vector<16x40xi32>
    %5 = vector.extract_strided_slice %0 {offsets = [0, 1], sizes = [16, 1], strides = [1, 1]} : vector<16x3xi32> to vector<16x1xi32>
    %c16_i32 = arith.constant 16 : i32
    %6 = vector.broadcast %c16_i32 : i32 to vector<16x1xi32>
    %7 = arith.addi %5, %6 : vector<16x1xi32>
    %8 = vector.broadcast %7 : vector<16x1xi32> to vector<16x40xi32>
    %9 = arith.cmpi eq, %8, %1 : vector<16x40xi32>
    %10 = arith.ori %4, %9 : vector<16x40xi1>
    %11 = vector.extract_strided_slice %0 {offsets = [0, 2], sizes = [16, 1], strides = [1, 1]} : vector<16x3xi32> to vector<16x1xi32>
    %c28_i32 = arith.constant 28 : i32
    %12 = vector.broadcast %c28_i32 : i32 to vector<16x1xi32>
    %13 = arith.addi %11, %12 : vector<16x1xi32>
    %14 = vector.broadcast %13 : vector<16x1xi32> to vector<16x40xi32>
    %15 = arith.cmpi eq, %14, %1 : vector<16x40xi32>
    %16 = arith.ori %10, %15 : vector<16x40xi1>
    %17 = arith.extui %16 : vector<16x40xi1> to vector<16x40xi32>
    %18 = arith.sitofp %17 : vector<16x40xi32> to vector<16x40xf32>
    %c0_1 = arith.constant 0 : index
    %c0_2 = arith.constant 0 : index
    %19 = vector.load %arg2[%c0_1, %c0_2] : memref<40x128xf32, #tpu.memory_space<vmem>>, vector<40x128xf32>
    %cst = arith.constant dense<0.000000e+00> : vector<16x128xf32>
    %20 = tpu.matmul %18, %19, %cst {dimension_numbers = #tpu.dot_dimension_numbers<[1], [0], [0], [1], [0, 0, 1, 1], [], []>, precision = #tpu.contract_precision<fp32>} : vector<16x40xf32>, vector<40x128xf32>, vector<16x128xf32> -> vector<16x128xf32>
    %c0_3 = arith.constant 0 : index
    %c0_4 = arith.constant 0 : index
    %21 = vector.load %arg3[%c0_3, %c0_4] : memref<16x128xf32, #tpu.memory_space<vmem>>, vector<16x128xf32>
    tpu.vector_store %arg3[%c0_3, %c0_4], %20 {strides = array<i32>} : memref<16x128xf32, #tpu.memory_space<vmem>>, vector<16x128xf32>,
    return
  }
  func.func @transform_0(%arg0: i32) -> (i32, i32) {
    %c0_i32 = arith.constant 0 : i32
    %c0_i32_0 = arith.constant 0 : i32
    return %arg0, %c0_i32 : i32, i32
  }
  func.func @transform_1(%arg0: i32) -> (i32, i32) {
    %c0_i32 = arith.constant 0 : i32
    %c0_i32_0 = arith.constant 0 : i32
    %c0_i32_1 = arith.constant 0 : i32
    return %c0_i32, %c0_i32_0 : i32, i32
  }
  func.func @transform_2(%arg0: i32) -> (i32, i32) {
    %c0_i32 = arith.constant 0 : i32
    %c0_i32_0 = arith.constant 0 : i32
    return %arg0, %c0_i32 : i32, i32
  }
}

</mosaic_0001>

<bundles_post_ra>
// kernel: _forward_impl.1
= control target key start
LH: loop header
LB: loop body
LE: loop exit
PB: predicated region body
PF: predicated region fallthrough
CT: control target
= control target key end

     0   :  { %7 = vsyncpa [#allocation3], 0  ;;  %s973_s0 = inlined_call_operand.vmem [shape: s32[16,3], index: 0, kind: input, shape index: {}]   ;;  %s974_s1 = inlined_call_operand.hbm [shape: f32[40,128], index: 1, kind: input, shape index: {}]   ;;  %s975_s2 = inlined_call_operand.hbm [shape: f32[16,128], index: 2, kind: output, shape index: {}]  }
   0x1   :  { %8 = vsyncpa [#allocation4], 0  ;;  %s824_s9 = smov [#allocation2]  }
   0x2   :  { %s16_s10 = sshll.u32 %s824_s9, 4  ;;  %s17_s10 = int_to_ptr.vmem [resolvable:$true] %s16_s10 }
   0x3   :  { %s788_s11 = scalar_lea.vmem %s17_s10, 640  ;;  %p793_p1 = scmp.lt.s32.totalorder %s17_s10, %s17_s10 }
   0x4   :  { %p789_p0 = scmp.ne.s32.totalorder %s17_s10, %s788_s11  ;;  %p794_p2 = scmp.lt.s32.totalorder %s788_s11, %s788_s11 }
   0x6   :  { %p795_p3 = por %p794_p2, %p793_p1 }
   0x8   :  { %p796_p4 = pnand %p795_p3, %p789_p0 }
   0xa   :  { %799 = shalt.err (!%p796_p4)
}
   0xb   :  { %s825_s12 = smov 128   ;;  %s826_s13 = smov 8  }
   0xc   :  { %22 = dma.hbm_to_vmem [thread:$0]  %s974_s1, 640, %s17_s10, [#allocation3], %s825_s12, %s825_s12, %s826_s13  }
   0xd   :  { %820 = dma.done.wait [#allocation3], 640  }
   0xe   :  { %821 = vsyncadd [#allocation3], 4294966656  ;;  %v827_v0 = vmov 0   ;;  %v27_v1 = vld [vmem:[%s973_s0 + $0x8] sm:$0xff]  ;;  %v26_v2 = vld [vmem:[%s973_s0] sm:$0xff]  ;;  %v828_v18 = vmov 1   ;;  %v28_v41 = vlaneseq }
   0xf   :  { %775 = vset.pattern.permute.xlu1 %v827_v0  ;;  %774 = vset.pattern.permute.xlu0 %v827_v0  ;;  %v70_v3 = vld [vmem:[#allocation2 + $0x20] sm:$0xff]  ;;  %v39_v4 = vadd.s32 16, %v27_v1  ;;  %v69_v5 = vld [vmem:[#allocation2 + $0x18] sm:$0xff]  ;;  %v68_v6 = vld [vmem:[#allocation2 + $0x10] sm:$0xff]  ;;  %v38_v7 = vadd.s32 16, %v26_v2  ;;  %v50_v24 = vadd.s32 28, %v26_v2 }
  0x10   :  { %34 = vperm.xlu1 %775, %v27_v1   ;;  %31 = vperm.xlu0 %774, %v26_v2   ;;  %v859_v8 = vand.u32 4294901760, %v70_v3  ;;  %v861_v9 = vand.u32 4294901760, %v69_v5  ;;  %v863_v10 = vand.u32 4294901760, %v68_v6  ;;  %v67_v11 = vld [vmem:[#allocation2 + $0x8] sm:$0xff]  ;;  %v66_v12 = vld [vmem:[#allocation2] sm:$0xff]  ;;  %v51_v25 = vadd.s32 28, %v27_v1 }
  0x11   :  { %v865_v13 = vand.u32 4294901760, %v67_v11  ;;  %v867_v14 = vand.u32 4294901760, %v66_v12  ;;  %v829_v31 = vmov 2   ;;  %v29_v42 = vand.u32 127, %v28_v41  ;;  %s831_s0 = smov [#allocation5]  }
  0x12   :  { %v870_v15 = vsub.f32 %v70_v3, %v859_v8  ;;  %v873_v16 = vsub.f32 %v69_v5, %v861_v9  ;;  %v876_v17 = vsub.f32 %v68_v6, %v863_v10  ;;  %688 = vmatprep.subr.mxu0 %v859_v8  ;;  %vm71_vm6 = vcmask 326656   ;;  %s626_s1 = sshll.u32 %s831_s0, 4  ;;  %s627_s1 = int_to_ptr.vmem [resolvable:$true] %s626_s1 }
  0x13   :  { %v880_v19 = vsub.f32 %v67_v11, %v865_v13  ;;  %v883_v20 = vsub.f32 %v66_v12, %v867_v14  ;;  %689 = vmatpush3.msra.mxu0 %v859_v8  ;;  %v830_v47 = vmov 0.0   ;;  %s800_s20 = scalar_lea.vmem %s627_s1, 256  ;;  %p805_p6 = scmp.lt.s32.totalorder %s627_s1, %s627_s1 }
  0x14   :  { %777 = vset.pattern.permute.xlu1 %v828_v18  ;;  %776 = vset.pattern.permute.xlu0 %v828_v18  ;;  %v886_v21 = vand.u32 4294901760, %v870_v15  ;;  %v889_v22 = vand.u32 4294901760, %v873_v16  ;;  %v892_v23 = vand.u32 4294901760, %v876_v17  ;;  %p801_p5 = scmp.ne.s32.totalorder %s627_s1, %s800_s20  ;;  %p806_p7 = scmp.lt.s32.totalorder %s800_s20, %s800_s20 }
  0x15   :  { %44 = vperm.xlu1 %777, %v39_v4   ;;  %41 = vperm.xlu0 %776, %v38_v7   ;;  %v895_v26 = vand.u32 4294901760, %v880_v19  ;;  %v905_v30 = vand.u32 4294901760, %v883_v20 }
  0x16   :  { %v194_v27 = vsub.f32 %v870_v15, %v886_v21  ;;  %v201_v28 = vsub.f32 %v873_v16, %v889_v22  ;;  %v208_v29 = vsub.f32 %v876_v17, %v892_v23  ;;  %690 = vmatprep.subr.mxu0 %v861_v9  ;;  %p807_p8 = por %p806_p7, %p805_p6 }
  0x17   :  { %691 = vmatpush3.msra.mxu0 %v861_v9  ;;  %v215_v34 = vsub.f32 %v880_v19, %v895_v26  ;;  %v222_v36 = vsub.f32 %v883_v20, %v905_v30 }
  0x18   :  { %v195_v32 = vand.u32 4294901760, %v194_v27  ;;  %v202_v33 = vand.u32 4294901760, %v201_v28  ;;  %v209_v35 = vand.u32 4294901760, %v208_v29  ;;  %692 = vmatprep.subr.mxu0 %v863_v10  ;;  %p808_p9 = pnand %p807_p8, %p801_p5 }
  0x19   :  { %778 = vset.pattern.permute.xlu1 %v829_v31  ;;  %779 = vset.pattern.permute.xlu0 %v829_v31  ;;  %v216_v37 = vand.u32 4294901760, %v215_v34  ;;  %v223_v38 = vand.u32 4294901760, %v222_v36 }
  0x1a   :  { %53 = vperm.xlu1 %778, %v50_v24   ;;  %56 = vperm.xlu0 %779, %v51_v25  }
  0x1b   :  { %701 = vmatprep.subr.mxu1 %v195_v32  ;;  %693 = vmatpush3.msra.mxu0 %v863_v10 }
  0x1c   :  { %702 = vmatpush3.msra.mxu1 %v195_v32  ;;  %694 = vmatprep.subr.mxu0 %v865_v13 }
  0x1d   :  { %703 = vmatprep.subr.mxu1 %v202_v33  ;;  %695 = vmatpush3.msra.mxu0 %v865_v13 }
  0x1e   :  { %704 = vmatpush3.msra.mxu1 %v202_v33  ;;  %696 = vmatprep.subr.mxu0 %v867_v14 }
  0x1f   :  { %705 = vmatprep.subr.mxu1 %v209_v35  ;;  %697 = vmatpush3.msra.mxu0 %v867_v14 }
  0x20   :  { %706 = vmatpush3.msra.mxu1 %v209_v35  ;;  %714 = vmatprep.subr.mxu0 %v870_v15 }
  0x21   :  { %707 = vmatprep.subr.mxu1 %v216_v37 }
  0x22   :  { %708 = vmatpush3.msra.mxu1 %v216_v37 }
  0x23   :  { %709 = vmatprep.subr.mxu1 %v223_v38 }
  0x24   :  { %710 = vmatpush3.msra.mxu1 %v223_v38 }
  0x25   :  { %727 = vmatprep.subr.mxu1 %v859_v8 }
  0x8b   :  { %v35_v39 = vpop.permute.xlu1 %34  ;;  %v32_v40 = vpop.permute.xlu0 %31 }
  0x8c   :  { %vm37_vm2 = vcmp.eq.s32.totalorder %v35_v39, %v29_v42  ;;  %vm36_vm3 = vcmp.eq.s32.totalorder %v32_v40, %v29_v42 }
  0x90   :  { %v45_v43 = vpop.permute.xlu1 %44  ;;  %v42_v44 = vpop.permute.xlu0 %41 }
  0x91   :  { %vm47_vm0 = vcmp.eq.s32.totalorder %v45_v43, %v29_v42  ;;  %vm46_vm1 = vcmp.eq.s32.totalorder %v42_v44, %v29_v42 }
  0x92   :  { %vm49_vm4 = vmor %vm37_vm2, %vm47_vm0 }
  0x93   :  { %vm48_vm5 = vmor %vm36_vm3, %vm46_vm1 }
  0x95   :  { %v54_v45 = vpop.permute.xlu1 %53  ;;  %v57_v46 = vpop.permute.xlu0 %56 }
  0x96   :  { %vm58_vm7 = vcmp.eq.s32.totalorder %v54_v45, %v29_v42  ;;  %vm59_vm8 = vcmp.eq.s32.totalorder %v57_v46, %v29_v42 }
  0x97   :  { %vm60_vm9 = vmor %vm48_vm5, %vm58_vm7 }
  0x98   :  { %v638_v48 = vsel %vm60_vm9, 1.0, %v830_v47  ;;  %vm61_vm10 = vmor %vm49_vm4, %vm59_vm8 }
  0x99   :  { %v73_v49 = vsel %vm71_vm6, %v638_v48, 0  ;;  %v639_v50 = vsel %vm61_vm10, 1.0, %v830_v47  ;;  %711 = vmatprep.mubr.msk.f32.mxu1 %vm71_vm6, %v638_v48 }
  0x9a   :  { %v149_v51 = vsub.f32 %v73_v49, %v73_v49  ;;  %v76_v52 = vsel %vm71_vm6, %v639_v50, 0  ;;  %712 = vmatmul.mubr.msk.f32.vlgmr.msra.gmra.mxu1 %vm71_vm6, %v639_v50 }
  0x9b   :  { %v159_v53 = vsub.f32 %v76_v52, %v76_v52  ;;  %728 = vmatpush3.msra.mxu1 %v859_v8 }
  0x9c   :  { %729 = vmatprep.subr.mxu1 %v861_v9  ;;  %v150_v54 = vand.u32 4294901760, %v149_v51 }
  0x9d   :  { %730 = vmatpush3.msra.mxu1 %v861_v9  ;;  %v160_v55 = vand.u32 4294901760, %v159_v53 }
  0x9e   :  { %731 = vmatprep.subr.mxu1 %v863_v10  ;;  %737 = vmatprep.mubr.f32.mxu1 %v150_v54  ;;  %v151_v56 = vsub.f32 %v149_v51, %v150_v54 }
  0x9f   :  { %732 = vmatpush3.msra.mxu1 %v863_v10  ;;  %v161_v57 = vsub.f32 %v159_v53, %v160_v55 }
  0xa0   :  { %733 = vmatprep.subr.mxu1 %v865_v13  ;;  %v152_v58 = vand.u32 4294901760, %v151_v56 }
  0xa1   :  { %734 = vmatpush3.msra.mxu1 %v865_v13  ;;  %v162_v59 = vand.u32 4294901760, %v161_v57 }
  0xa2   :  { %735 = vmatprep.subr.mxu1 %v867_v14  ;;  %698 = vmatprep.mubr.f32.mxu0 %v152_v58 }
  0xa3   :  { %736 = vmatpush3.msra.mxu1 %v867_v14  ;;  %699 = vmatmul.mubr.f32.vlgmr.msra.gmra.mxu0 %v162_v59 }
  0xa4   :  { %715 = vmatpush3.msra.mxu0 %v870_v15  ;;  %738 = vmatmul.mubr.f32.vlgmr.msra.gmra.mxu1 %v160_v55 }
  0xa5   :  { %753 = vmatprep.subr.mxu1 %v859_v8  ;;  %716 = vmatprep.subr.mxu0 %v873_v16 }
  0xa6   :  { %724 = vmatprep.mubr.f32.mxu0 %v149_v51  ;;  %754 = vmatpush3.msra.mxu1 %v859_v8 }
  0xa7   :  { %763 = vmatprep.mubr.msk.f32.mxu1 %vm71_vm6, %v638_v48  ;;  %717 = vmatpush3.msra.mxu0 %v873_v16 }
  0xa8   :  { %755 = vmatprep.subr.mxu1 %v861_v9  ;;  %718 = vmatprep.subr.mxu0 %v876_v17 }
  0xa9   :  { %756 = vmatpush3.msra.mxu1 %v861_v9  ;;  %719 = vmatpush3.msra.mxu0 %v876_v17 }
  0xaa   :  { %757 = vmatprep.subr.mxu1 %v863_v10  ;;  %720 = vmatprep.subr.mxu0 %v880_v19 }
  0xab   :  { %758 = vmatpush3.msra.mxu1 %v863_v10  ;;  %721 = vmatpush3.msra.mxu0 %v880_v19 }
  0xac   :  { %759 = vmatprep.subr.mxu1 %v865_v13  ;;  %722 = vmatprep.subr.mxu0 %v883_v20 }
  0xad   :  { %760 = vmatpush3.msra.mxu1 %v865_v13  ;;  %723 = vmatpush3.msra.mxu0 %v883_v20 }
  0xae   :  { %761 = vmatprep.subr.mxu1 %v867_v14  ;;  %725 = vmatmul.mubr.f32.vlgmr.msra.gmra.mxu0 %v159_v53 }
  0xaf   :  { %740 = vmatprep.subr.mxu0 %v886_v21  ;;  %762 = vmatpush3.msra.mxu1 %v867_v14 }
  0xb0   :  { %741 = vmatpush3.msra.mxu0 %v886_v21  ;;  %750 = vmatprep.mubr.msk.f32.mxu0 %vm71_vm6, %v638_v48 }
  0xb1   :  { %764 = vmatmul.mubr.msk.f32.vlgmr.msra.gmra.mxu1 %vm71_vm6, %v639_v50  ;;  %742 = vmatprep.subr.mxu0 %v889_v22 }
  0xb2   :  { %743 = vmatpush3.msra.mxu0 %v889_v22 }
  0xb3   :  { %744 = vmatprep.subr.mxu0 %v892_v23 }
  0xb4   :  { %745 = vmatpush3.msra.mxu0 %v892_v23 }
  0xb5   :  { %746 = vmatprep.subr.mxu0 %v895_v26 }
  0xb6   :  { %747 = vmatpush3.msra.mxu0 %v895_v26 }
  0xb7   :  { %748 = vmatprep.subr.mxu0 %v905_v30 }
  0xb8   :  { %749 = vmatpush3.msra.mxu0 %v905_v30 }
  0xb9   :  { %751 = vmatmul.mubr.msk.f32.vlgmr.msra.gmra.mxu0 %vm71_vm6, %v639_v50 }
 0x15a   :  { %v713_v61 = vpop.f32.mrf.mxu1 }
 0x15c   :  { %v260_v0 = vpop.f32.mrf.mxu1 }
 0x163   :  { %v700_v60 = vpop.f32.mrf.mxu0 }
 0x164   :  { %v267_v1 = vadd.f32 %v713_v61, %v700_v60  ;;  %v739_v2 = vpop.f32.mrf.mxu1 }
 0x165   :  { %v154_v62 = vpop.f32.mrf.mxu0 }
 0x166   :  { %v261_v4 = vadd.f32 %v260_v0, %v154_v62  ;;  %v433_v7 = vpop.f32.mrf.mxu1 }
 0x16e   :  { %v726_v63 = vpop.f32.mrf.mxu0 }
 0x16f   :  { %v356_v5 = vadd.f32 %v726_v63, %v267_v1 }
 0x170   :  { %v348_v3 = vpop.f32.mrf.mxu0 }
 0x171   :  { %v349_v6 = vadd.f32 %v348_v3, %v261_v4  ;;  %v442_v8 = vadd.f32 %v739_v2, %v356_v5  ;;  %v765_v9 = vpop.f32.mrf.mxu1 }
 0x173   :  { %v434_v12 = vadd.f32 %v433_v7, %v349_v6  ;;  %v609_v16 = vpop.f32.mrf.mxu1 }
 0x179   :  { %v752_v10 = vpop.f32.mrf.mxu0 }
 0x17a   :  { %v534_v11 = vadd.f32 %v752_v10, %v442_v8 }
 0x17b   :  { %v527_v13 = vpop.f32.mrf.mxu0 }
 0x17c   :  { %v616_v14 = vadd.f32 %v765_v9, %v534_v11  ;;  %v528_v15 = vadd.f32 %v527_v13, %v434_v12 }
 0x17e   :  { %620 = vst [vmem:[#allocation5 + $0x8] sm:$0xff] %v616_v14  ;;  %v610_v17 = vadd.f32 %v609_v16, %v528_v15 }
 0x180   :  { %619 = vst [vmem:[#allocation5] sm:$0xff] %v610_v17 }
 0x181   :  { %811 = shalt.err (!%p808_p9)
}
 0x182   :  { %632 = dma.vmem_to_hbm [thread:$0]  %s627_s1, 256, %s975_s2, [#allocation4], %s825_s12, %s825_s12, %s826_s13  }
 0x183   :  { %822 = dma.done.wait [#allocation4], 256  }
 0x184   :  { %823 = vsyncadd [#allocation4], 4294967040 }
 0x185   :  { %636 = vsyncpa [#allocation3], 1 }
 0x186   :  { %637 = vsyncpa [#allocation4], 1 }

</bundles_post_ra>
